<compile_context>
chip_gen: v7x
topology: tpu7x:2x2x1
jax: 0.10.0
libtpu: 0.0.40
codegen_flags: <defaults>
</compile_context>

<pallas_src>
import functools

import jax
import jax.numpy as jnp
from jax.experimental import pallas as pl
from jax.experimental.pallas import tpu as pltpu


# Workloads with at most this many rows (e.g. single-token decode with
# bs*n_heads rows) are quantized in plain jnp: a Pallas launch would cost more
# than the math itself.
_JNP_PATH_MAX_ROWS = 64


def _round_up(x, m):
    return ((x + m - 1) // m) * m


def _choose_tile_rows(n_rows, d, itemsize, n_tensors):
    """Pick the row-tile (sublane) size for the quant kernel.

    Budget ~8 MiB of VMEM for the double-buffered input + output tiles so the
    pipeline stays double-buffered on every generation, cap at 1024 rows
    (measured mem-bound tiling shows ~85% of HBM roofline from 512 rows up),
    and always target >=2 grid steps (>=4 once there is enough work) so the
    pipeline overlaps DMA with compute and v7x can shard across both
    TensorCores — a grid of 1 serializes DMA-in / compute / DMA-out.
    """
    budget = 8 * 1024 * 1024
    per_row = n_tensors * 4 * d * max(int(itemsize), 1)  # 2 in-bufs + 2 out-bufs
    tm_max = max(32, min(1024, (budget // per_row) // 32 * 32))
    target_blocks = 4 if n_rows >= 256 else 2
    tm = _round_up((n_rows + target_blocks - 1) // target_blocks, 32)
    # Multiple of 32 keeps bf16 (16,128) / int8 (32,128) sublane packing aligned.
    return max(32, min(tm, tm_max))


# ----------------------------------------------------------------------------
# Shared quantization math (used by the Pallas kernel, the jnp fast path for
# tiny decode slices, and the reference check). Asymmetric min/max fake quant.
# ----------------------------------------------------------------------------
def _quant_body(x, n_levels):
    x = x.astype(jnp.float32)
    xmin = jnp.min(x, axis=-1, keepdims=True)
    xmax = jnp.max(x, axis=-1, keepdims=True)
    inv_levels = 1.0 / float(n_levels - 1)
    scale = (xmax - xmin) * inv_levels
    # Guard constant rows against divide-by-zero.
    scale = jnp.where(scale <= 0.0, jnp.ones_like(scale), scale)
    # Hoisted divide: one exact reciprocal per row, multiplies per element.
    # (Exact 1/scale, not pl.reciprocal(approx=True): the approximation could
    # flip jnp.round at ties and change quantized codes.)
    inv_scale = 1.0 / scale
    zp = jnp.round(-xmin * inv_scale)
    # +zp/-zp folded into the clip bounds (bit-identical: zp and the rounded
    # code are small integral f32 values).
    r = jnp.round(x * inv_scale)
    deq = jnp.clip(r, -zp, float(n_levels - 1) - zp) * scale
    return deq, scale, zp


def _pack_scale_zp(scale, zp, shape, dtype):
    """Merge per-row scale and zp into one (TM, 2) slab -> single store/DMA."""
    lane = jax.lax.broadcasted_iota(jnp.int32, shape, 1)
    return jnp.where(lane == 0, scale, zp).astype(dtype)


# ----------------------------------------------------------------------------
# Pallas kernels
# ----------------------------------------------------------------------------
def _quant_kernel(x_ref, q_ref, sz_ref, *, n_levels):
    deq, scale, zp = _quant_body(x_ref[...], n_levels)
    q_ref[...] = deq.astype(q_ref.dtype)
    sz_ref[...] = _pack_scale_zp(scale, zp, sz_ref.shape, sz_ref.dtype)


def _quant_kernel_fused(a_ref, b_ref, aq_ref, asz_ref, bq_ref, bsz_ref,
                        *, a_levels, b_levels):
    deq, scale, zp = _quant_body(a_ref[...], a_levels)
    aq_ref[...] = deq.astype(aq_ref.dtype)
    asz_ref[...] = _pack_scale_zp(scale, zp, asz_ref.shape, asz_ref.dtype)

    deq, scale, zp = _quant_body(b_ref[...], b_levels)
    bq_ref[...] = deq.astype(bq_ref.dtype)
    bsz_ref[...] = _pack_scale_zp(scale, zp, bsz_ref.shape, bsz_ref.dtype)


_COMPILER_PARAMS = pltpu.CompilerParams(
    dimension_semantics=("parallel",),
    vmem_limit_bytes=32 * 1024 * 1024,
)


# ----------------------------------------------------------------------------
# Wrappers: [R, D] rows -> (fake_quant [R, D], scale [R, 1], zp [R, 1])
# ----------------------------------------------------------------------------
def _quant_rows(x2d, n_bits):
    R, D = x2d.shape
    out_dtype = x2d.dtype
    n_levels = 2 ** n_bits

    if R <= _JNP_PATH_MAX_ROWS:
        # Tiny workload (decode): plain jnp, identical formula, no launch cost.
        deq, scale, zp = _quant_body(x2d, n_levels)
        return deq.astype(out_dtype), scale, zp

    # TODO(synk): when D < 128 (e.g. head_dim 32/64), packing 128/D tokens per
    # lane row with a segmented lane reduction would restore full vreg
    # occupancy; skipped here to avoid in-kernel relayout complexity.
    TM = _choose_tile_rows(R, D, jnp.dtype(out_dtype).itemsize, n_tensors=1)
    nb = pl.cdiv(R, TM)  # ragged last block is masked by Pallas; no jnp.pad

    row_spec = pl.BlockSpec((TM, D), lambda i: (i, 0))
    sz_spec = pl.BlockSpec((TM, 2), lambda i: (i, 0))

    q, sz = pl.pallas_call(
        functools.partial(_quant_kernel, n_levels=n_levels),
        out_shape=(
            jax.ShapeDtypeStruct((R, D), out_dtype),
            jax.ShapeDtypeStruct((R, 2), jnp.float32),
        ),
        grid=(nb,),
        in_specs=[row_spec],
        out_specs=(row_spec, sz_spec),
        compiler_params=_COMPILER_PARAMS,
    )(x2d)
    return q, sz[:, 0:1], sz[:, 1:2]


def _quant_rows_fused(a2d, b2d, a_bits, b_bits):
    """Quantize two same-shaped [R, D] row sets in a single pallas_call."""
    R, D = a2d.shape
    a_dtype, b_dtype = a2d.dtype, b2d.dtype
    itemsize = max(jnp.dtype(a_dtype).itemsize, jnp.dtype(b_dtype).itemsize)

    TM = _choose_tile_rows(R, D, itemsize, n_tensors=2)
    nb = pl.cdiv(R, TM)  # ragged last block is masked by Pallas; no jnp.pad

    row_spec = pl.BlockSpec((TM, D), lambda i: (i, 0))
    sz_spec = pl.BlockSpec((TM, 2), lambda i: (i, 0))

    aq, asz, bq, bsz = pl.pallas_call(
        functools.partial(_quant_kernel_fused,
                          a_levels=2 ** a_bits, b_levels=2 ** b_bits),
        out_shape=(
            jax.ShapeDtypeStruct((R, D), a_dtype),
            jax.ShapeDtypeStruct((R, 2), jnp.float32),
            jax.ShapeDtypeStruct((R, D), b_dtype),
            jax.ShapeDtypeStruct((R, 2), jnp.float32),
        ),
        grid=(nb,),
        in_specs=[row_spec, row_spec],
        out_specs=(row_spec, sz_spec, row_spec, sz_spec),
        compiler_params=_COMPILER_PARAMS,
    )(a2d, b2d)
    return ((aq, asz[:, 0:1], asz[:, 1:2]),
            (bq, bsz[:, 0:1], bsz[:, 1:2]))


# ----------------------------------------------------------------------------
# SKVQuantProcessor (JAX/Pallas version)
# ----------------------------------------------------------------------------
class SKVQuantProcessorPallas:
    def __init__(self, k_bits=4, v_bits=4, fake_quant=True):
        self.k_bits = k_bits
        self.v_bits = v_bits
        self.fake_quant = fake_quant
        self.layer_idx = None

    def _quant(self, x, n_bits):
        if x is None or x.shape[-2] == 0:
            return (None, None, None)
        bs, h, s, d = x.shape
        q2, s2, z2 = _quant_rows(x.reshape(bs * h * s, d), n_bits)
        return (q2.reshape(bs, h, s, d),
                s2.reshape(bs, h, s, 1),
                z2.reshape(bs, h, s, 1))

    def __call__(self, k, v):
        k_ok = k is not None and k.shape[-2] > 0
        v_ok = v is not None and v.shape[-2] > 0
        if k_ok and v_ok and k.shape == v.shape and k.dtype == v.dtype:
            bs, h, s, d = k.shape
            R = bs * h * s
            if R > _JNP_PATH_MAX_ROWS:
                # Fused K+V quantization: one pallas_call per layer step.
                (kq, ks, kz), (vq, vs, vz) = _quant_rows_fused(
                    k.reshape(R, d), v.reshape(R, d), self.k_bits, self.v_bits)
                return ((kq.reshape(bs, h, s, d),
                         ks.reshape(bs, h, s, 1),
                         kz.reshape(bs, h, s, 1)),
                        (vq.reshape(bs, h, s, d),
                         vs.reshape(bs, h, s, 1),
                         vz.reshape(bs, h, s, 1)))
        return self._quant(k, self.k_bits), self._quant(v, self.v_bits)

    def dequant(self, which, q, scale, zp):
        # fake_quant=True: q already holds dequantized values
        return q


# ----------------------------------------------------------------------------
# SlidingKVCacheManager (JAX/Pallas version of the PyTorch module)
# ----------------------------------------------------------------------------
class SlidingKVCacheManagerPallas:
    def __init__(self, pre_rope, window_size=0, attention_sink=0,
                 processor_config=None, full_prefill=True, KIVI_mode=False,
                 fake_quant=True, use_acc_score=0.0, use_random=0.0):
        self.window_size = window_size
        self.acc_scores = None
        self.attention_sink = attention_sink
        self.attention_mask = None
        self.KV_processor = SKVQuantProcessorPallas(**(processor_config or {}))
        self.pre_rope = pre_rope
        self.full_prefill = full_prefill
        self.active = True
        self.fake_quant = fake_quant
        self.KIVI_mode = KIVI_mode
        self.use_acc_score = use_acc_score
        self.use_random = use_random

    def clear(self):
        self.acc_scores = None

    def get_ctx_len(self, k_past):
        if k_past is None:
            return (0, 0, 0)
        k_sink, k_quant, k_window, _, _ = k_past
        k_sink_len = k_sink.shape[-2] if k_sink is not None else 0
        k_quant_len = k_quant.shape[-2] if k_quant is not None else 0
        k_window_len = k_window.shape[-2] if k_window is not None else 0
        return (k_sink_len, k_quant_len, k_window_len)

    def forward(self, k_past, v_past, k_fresh, v_fresh, layer_idx):
        self.KV_processor.layer_idx = layer_idx
        is_prefill = k_past is None

        if self.KIVI_mode:
            residual_length = self.window_size
            k_sink, v_sink = None, None
            kscale, vscale = None, None
            kzp, vzp = None, None
            if is_prefill:
                ctx_len = k_fresh.shape[-2]
                if ctx_len % residual_length != 0:
                    if ctx_len < residual_length:
                        k_quant = None
                        k_window = k_fresh
                    else:
                        k_quant = k_fresh[:, :, :-(ctx_len % residual_length), :]
                        k_window = k_fresh[:, :, -(ctx_len % residual_length):, :]
                else:
                    k_quant = k_fresh
                    k_window = None
                if ctx_len <= residual_length:
                    v_quant = None
                    v_window = v_fresh
                else:
                    v_quant = v_fresh[:, :, :-residual_length, :]
                    v_window = v_fresh[:, :, -residual_length:, :]
                (k_quant, _, _), (v_quant, _, _) = self.KV_processor(k_quant, v_quant)
            else:
                k_sink, k_quant, k_window, kscale, kzp = k_past
                v_sink, v_quant, v_window, vscale, vzp = v_past
                if k_window is not None:
                    k_window = jnp.concatenate([k_window, k_fresh], axis=2)
                else:
                    k_window = k_fresh
                if k_window.shape[-2] == residual_length:
                    (k_quant_new, _, _), _ = self.KV_processor(k_window, None)
                    if k_quant is not None:
                        k_quant = jnp.concatenate([k_quant, k_quant_new], axis=2)
                    else:
                        k_quant = k_quant_new
                    k_window = None
                v_window = jnp.concatenate([v_window, v_fresh], axis=2)
                value_full_length = v_window.shape[-2]
                if value_full_length > residual_length:
                    assert value_full_length == residual_length + 1
                    _, (v_quant_new, _, _) = self.KV_processor(None, v_window[:, :, :1, :])
                    if v_quant is not None:
                        v_quant = jnp.concatenate([v_quant, v_quant_new], axis=2)
                    else:
                        v_quant = v_quant_new
                    v_window = v_window[:, :, 1:, :]
            return ((k_sink, k_quant, k_window, kscale, kzp),
                    (v_sink, v_quant, v_window, vscale, vzp))

        if is_prefill:
            ctx_len = k_fresh.shape[-2]
            n_quantize = ctx_len - (self.attention_sink + self.window_size)
            if n_quantize > 0:
                qr = (self.attention_sink, self.attention_sink + n_quantize)
                (k_quant, kscale, kzp), (v_quant, vscale, vzp) = self.KV_processor(
                    k_fresh[:, :, qr[0]:qr[1], :], v_fresh[:, :, qr[0]:qr[1], :])
                k_sink = k_fresh[:, :, :self.attention_sink, :] if self.attention_sink else None
                k_window = k_fresh[:, :, -self.window_size:, :] if self.window_size else None
                v_sink = v_fresh[:, :, :self.attention_sink, :] if self.attention_sink else None
                v_window = v_fresh[:, :, -self.window_size:, :] if self.window_size else None
            else:
                (k_quant, kscale, kzp), (v_quant, vscale, vzp) = ((None, None, None),
                                                                  (None, None, None))
                if ctx_len <= self.attention_sink:
                    k_window, v_window = None, None
                else:
                    k_window = k_fresh[:, :, self.attention_sink:, :]
                    v_window = v_fresh[:, :, self.attention_sink:, :]
                k_sink = k_fresh[:, :, :self.attention_sink, :] if self.attention_sink else None
                v_sink = v_fresh[:, :, :self.attention_sink, :] if self.attention_sink else None
            return ((k_sink, k_quant, k_window, kscale, kzp),
                    (v_sink, v_quant, v_window, vscale, vzp))
        else:
            # TODO(synk): the growing-cache decode path (full-cache concatenate per
            # token, O(cache_len) HBM per step) matches the PyTorch module's return
            # contract; a preallocated, in-place-updated cache
            # (lax.dynamic_update_slice / input_output_aliases) would be O(1) per
            # token but changes the interface.
            k_sink, k_quant, k_window, kscale, kzp = k_past
            v_sink, v_quant, v_window, vscale, vzp = v_past
            k_sink_len, k_quant_len, k_window_len = self.get_ctx_len(k_past)
            if k_sink_len > 0 and k_sink_len < self.attention_sink:
                k_sink = jnp.concatenate((k_sink, k_fresh), axis=-2)
                v_sink = jnp.concatenate((v_sink, v_fresh), axis=-2)
                return ((k_sink, k_quant, k_window, kscale, kzp),
                        (v_sink, v_quant, v_window, vscale, vzp))
            if k_window_len < self.window_size:
                k_window = k_fresh if k_window is None else jnp.concatenate((k_window, k_fresh), axis=-2)
                v_window = v_fresh if v_window is None else jnp.concatenate((v_window, v_fresh), axis=-2)
                return ((k_sink, k_quant, k_window, kscale, kzp),
                        (v_sink, v_quant, v_window, vscale, vzp))
            k_to_be_processed = k_window[:, :, :1, :] if self.window_size else k_fresh
            v_to_be_processed = v_window[:, :, :1, :] if self.window_size else v_fresh
            (k_quant_new, kscale_new, kzp_new), (v_quant_new, vscale_new, vzp_new) = \
                self.KV_processor(k_to_be_processed, v_to_be_processed)
            # Note: gating on k_quant_len (not v_quant_len) mirrors the PyTorch module.
            k_quant = jnp.concatenate((k_quant, k_quant_new), axis=-2) if k_quant_len else k_quant_new
            v_quant = jnp.concatenate((v_quant, v_quant_new), axis=-2) if k_quant_len else v_quant_new
            if kscale_new is not None:
                kscale = jnp.concatenate((kscale, kscale_new), axis=-2) if k_quant_len else kscale_new
                vscale = jnp.concatenate((vscale, vscale_new), axis=-2) if k_quant_len else vscale_new
                kzp = jnp.concatenate((kzp, kzp_new), axis=-2) if k_quant_len else kzp_new
                vzp = jnp.concatenate((vzp, vzp_new), axis=-2) if k_quant_len else vzp_new
            k_window = jnp.concatenate((k_window[:, :, 1:, :], k_fresh), axis=-2) if self.window_size else None
            v_window = jnp.concatenate((v_window[:, :, 1:, :], v_fresh), axis=-2) if self.window_size else None
            return ((k_sink, k_quant, k_window, kscale, kzp),
                    (v_sink, v_quant, v_window, vscale, vzp))

    def dequant(self, k_quant, kscale, kzp, v_quant, vscale, vzp):
        return (self.KV_processor.dequant('k', k_quant, kscale, kzp),
                self.KV_processor.dequant('v', v_quant, vscale, vzp))


if __name__ == "__main__":
    key = jax.random.PRNGKey(0)
    bs, n_heads, seq, head_hidden = 2, 4, 16, 32
    attention_sink, window_size = 2, 4

    k1, k2, k3, k4, k5 = jax.random.split(key, 5)
    k_fresh = jax.random.normal(k1, (bs, n_heads, seq, head_hidden), dtype=jnp.float32)
    v_fresh = jax.random.normal(k2, (bs, n_heads, seq, head_hidden), dtype=jnp.float32)

    # ---- standalone single-tensor Pallas path check (ragged grid: 160 rows) ----
    x_chk = jax.random.normal(k5, (160, head_hidden), dtype=jnp.float32)
    q_chk, s_chk, z_chk = _quant_rows(x_chk, 4)
    jax.block_until_ready((q_chk, s_chk, z_chk))
    ref_q, ref_s, ref_z = _quant_body(x_chk, 2 ** 4)   # same formula, evaluated by XLA
    assert q_chk.shape == (160, head_hidden)
    assert s_chk.shape == (160, 1) and z_chk.shape == (160, 1)
    assert jnp.allclose(q_chk, ref_q.astype(q_chk.dtype), atol=1e-5, rtol=1e-5)
    assert jnp.allclose(s_chk, ref_s, atol=1e-6, rtol=1e-6)
    assert jnp.allclose(z_chk, ref_z, atol=1e-6, rtol=1e-6)

    mgr = SlidingKVCacheManagerPallas(
        pre_rope=False, window_size=window_size, attention_sink=attention_sink,
        processor_config={"k_bits": 4, "v_bits": 4, "fake_quant": True})

    # ---- prefill (fused K+V Pallas kernel: R = bs*n_heads*n_quantize = 80 rows) ----
    k_past, v_past = mgr.forward(None, None, k_fresh, v_fresh, layer_idx=0)
    k_sink, k_quant, k_window, kscale, kzp = k_past
    v_sink, v_quant, v_window, vscale, vzp = v_past
    jax.block_until_ready((k_quant, kscale, kzp, v_quant, vscale, vzp))

    # sanity check the Pallas quant kernel against a pure-jnp reference
    n_quantize = seq - (attention_sink + window_size)
    k_slice = k_fresh[:, :, attention_sink:attention_sink + n_quantize, :]
    ref_q, ref_s, ref_z = _quant_body(k_slice, 2 ** 4)
    assert jnp.allclose(k_quant, ref_q.astype(k_quant.dtype), atol=1e-5, rtol=1e-5)
    assert jnp.allclose(kscale[..., 0], ref_s[..., 0], atol=1e-6, rtol=1e-6)
    assert jnp.allclose(kzp[..., 0], ref_z[..., 0], atol=1e-6, rtol=1e-6)

    v_slice = v_fresh[:, :, attention_sink:attention_sink + n_quantize, :]
    ref_vq, ref_vs, ref_vz = _quant_body(v_slice, 2 ** 4)
    assert jnp.allclose(v_quant, ref_vq.astype(v_quant.dtype), atol=1e-5, rtol=1e-5)
    assert jnp.allclose(vscale[..., 0], ref_vs[..., 0], atol=1e-6, rtol=1e-6)

    # shape checks per the module's contract
    assert k_sink.shape == (bs, n_heads, attention_sink, head_hidden)
    assert k_window.shape == (bs, n_heads, window_size, head_hidden)
    assert k_quant.shape == (bs, n_heads, n_quantize, head_hidden)
    assert kscale.shape == (bs, n_heads, n_quantize, 1)
    assert v_quant.shape == (bs, n_heads, n_quantize, head_hidden)
    assert vscale.shape == (bs, n_heads, n_quantize, 1)

    # ---- one decode step (tiny slice -> jnp fast path, cache bookkeeping unchanged) ----
    k_new = jax.random.normal(k3, (bs, n_heads, 1, head_hidden), dtype=jnp.float32)
    v_new = jax.random.normal(k4, (bs, n_heads, 1, head_hidden), dtype=jnp.float32)
    k_past2, v_past2 = mgr.forward(k_past, v_past, k_new, v_new, layer_idx=0)
    k_sink2, k_quant2, k_window2, kscale2, kzp2 = k_past2
    jax.block_until_ready((k_quant2, kscale2, kzp2))

    assert k_quant2.shape == (bs, n_heads, n_quantize + 1, head_hidden)
    assert k_window2.shape == (bs, n_heads, window_size, head_hidden)
    assert kscale2.shape == (bs, n_heads, n_quantize + 1, 1)

    print("KERNEL_OK")
</pallas_src>

<mosaic_0001>
module attributes {stable_mosaic.version = 11 : i64} {
  func.func @_quant_kernel(%arg0: i32, %arg1: memref<96x32xf32, #tpu.memory_space<vmem>>, %arg2: memref<96x32xf32, #tpu.memory_space<vmem>>, %arg3: memref<96x2xf32, #tpu.memory_space<vmem>>) attributes {dimension_semantics = [#tpu.dimension_semantics<parallel>], iteration_bounds = array<i64: 2>, scalar_prefetch = 0 : i64, scratch_operands = 0 : i64, tpu.core_type = #tpu.core_type<tc>, window_params = [{transform_indices = @transform_0, window_bounds = array<i64: 96, 32>}, {transform_indices = @transform_1, window_bounds = array<i64: 96, 32>}, {transform_indices = @transform_2, window_bounds = array<i64: 96, 2>}]} {
    %c0 = arith.constant 0 : index
    %c0_0 = arith.constant 0 : index
    %0 = vector.load %arg1[%c0, %c0_0] : memref<96x32xf32, #tpu.memory_space<vmem>>, vector<96x32xf32>
    %cst = arith.constant dense<0x7F800000> : vector<96xf32>
    %1 = vector.multi_reduction <minimumf>, %0, %cst [1] : vector<96x32xf32> to vector<96xf32>
    %2 = vector.shape_cast %1 : vector<96xf32> to vector<96x1xf32>
    %cst_1 = arith.constant dense<0xFF800000> : vector<96xf32>
    %3 = vector.multi_reduction <maximumf>, %0, %cst_1 [1] : vector<96x32xf32> to vector<96xf32>
    %4 = vector.shape_cast %3 : vector<96xf32> to vector<96x1xf32>
    %5 = arith.subf %4, %2 : vector<96x1xf32>
    %cst_2 = arith.constant 0.0666666701 : f32
    %6 = vector.broadcast %cst_2 : f32 to vector<96x1xf32>
    %7 = arith.mulf %5, %6 : vector<96x1xf32>
    %cst_3 = arith.constant 0.000000e+00 : f32
    %8 = vector.broadcast %cst_3 : f32 to vector<96x1xf32>
    %9 = arith.cmpf ole, %7, %8 : vector<96x1xf32>
    %cst_4 = arith.constant 1.000000e+00 : f32
    %10 = vector.broadcast %cst_4 : f32 to vector<96x1xf32>
    %11 = arith.select %9, %10, %7 : vector<96x1xi1>, vector<96x1xf32>
    %cst_5 = arith.constant 1.000000e+00 : f32
    %12 = vector.broadcast %cst_5 : f32 to vector<96x1xf32>
    %13 = arith.divf %12, %11 : vector<96x1xf32>
    %cst_6 = arith.constant 0.000000e+00 : f32
    %14 = vector.broadcast %cst_6 : f32 to vector<96x1xf32>
    %15 = arith.subf %14, %2 : vector<96x1xf32>
    %16 = arith.mulf %15, %13 : vector<96x1xf32>
    %17 = math.roundeven %16 : vector<96x1xf32>
    %18 = vector.broadcast %13 : vector<96x1xf32> to vector<96x32xf32>
    %19 = arith.mulf %0, %18 : vector<96x32xf32>
    %20 = math.roundeven %19 : vector<96x32xf32>
    %cst_7 = arith.constant 0.000000e+00 : f32
    %21 = vector.broadcast %cst_7 : f32 to vector<96x1xf32>
    %22 = arith.subf %21, %17 : vector<96x1xf32>
    %cst_8 = arith.constant 1.500000e+01 : f32
    %23 = vector.broadcast %cst_8 : f32 to vector<96x1xf32>
    %24 = arith.subf %23, %17 : vector<96x1xf32>
    %25 = vector.broadcast %22 : vector<96x1xf32> to vector<96x32xf32>
    %26 = arith.maximumf %25, %20 : vector<96x32xf32>
    %27 = vector.broadcast %24 : vector<96x1xf32> to vector<96x32xf32>
    %28 = arith.minimumf %27, %26 : vector<96x32xf32>
    %29 = vector.broadcast %11 : vector<96x1xf32> to vector<96x32xf32>
    %30 = arith.mulf %28, %29 : vector<96x32xf32>
    %c0_9 = arith.constant 0 : index
    %c0_10 = arith.constant 0 : index
    %31 = vector.load %arg2[%c0_9, %c0_10] : memref<96x32xf32, #tpu.memory_space<vmem>>, vector<96x32xf32>
    tpu.vector_store %arg2[%c0_9, %c0_10], %30 {strides = array<i32>} : memref<96x32xf32, #tpu.memory_space<vmem>>, vector<96x32xf32>,
    %32 = tpu.iota {dimensions = array<i32: 1>} : vector<96x2xi32>
    %c0_i32 = arith.constant 0 : i32
    %33 = vector.broadcast %c0_i32 : i32 to vector<96x2xi32>
    %34 = arith.cmpi eq, %32, %33 : vector<96x2xi32>
    %35 = vector.shape_cast %11 : vector<96x1xf32> to vector<96x1xf32>
    %36 = vector.broadcast %35 : vector<96x1xf32> to vector<96x2xf32>
    %37 = vector.shape_cast %17 : vector<96x1xf32> to vector<96x1xf32>
    %38 = vector.broadcast %37 : vector<96x1xf32> to vector<96x2xf32>
    %39 = arith.select %34, %36, %38 : vector<96x2xi1>, vector<96x2xf32>
    %c0_11 = arith.constant 0 : index
    %c0_12 = arith.constant 0 : index
    %40 = vector.load %arg3[%c0_11, %c0_12] : memref<96x2xf32, #tpu.memory_space<vmem>>, vector<96x2xf32>
    tpu.vector_store %arg3[%c0_11, %c0_12], %39 {strides = array<i32>} : memref<96x2xf32, #tpu.memory_space<vmem>>, vector<96x2xf32>,
    return
  }
  func.func @transform_0(%arg0: i32) -> (i32, i32) {
    %c0_i32 = arith.constant 0 : i32
    %c0_i32_0 = arith.constant 0 : i32
    return %arg0, %c0_i32 : i32, i32
  }
  func.func @transform_1(%arg0: i32) -> (i32, i32) {
    %c0_i32 = arith.constant 0 : i32
    %c0_i32_0 = arith.constant 0 : i32
    return %arg0, %c0_i32 : i32, i32
  }
  func.func @transform_2(%arg0: i32) -> (i32, i32) {
    %c0_i32 = arith.constant 0 : i32
    %c0_i32_0 = arith.constant 0 : i32
    return %arg0, %c0_i32 : i32, i32
  }
}

</mosaic_0001>

<bundles_post_ra>
// kernel: tpu_custom_call.1
= control target key start
LH: loop header
LB: loop body
LE: loop exit
PB: predicated region body
PF: predicated region fallthrough
CT: control target
= control target key end

     0   :  { %s1400_s9 = smov 0   ;;  %s1402_s10 = smov 0   ;;  %s1830_s0 = inlined_call_operand.vmem [shape: f32[160,32], index: 0, kind: input, shape index: {}]   ;;  %s1831_s1 = inlined_call_operand.vmem [shape: f32[160,32], index: 1, kind: output, shape index: {0}]   ;;  %s1832_s2 = inlined_call_operand.vmem [shape: f32[160,2], index: 2, kind: output, shape index: {1}]  }
   0x1   :  { %s1404_s11 = smov 0  }
   0x2 LB: > { %s1413_s12 = sadd.s32 4294967295, %s1319_s11   ;;  %s1415_s13 = sadd.s32 1, %s1319_s11   ;;  %s1319_s11 = sphi %s1404_s11, %s1842_s11   ;;  %s1315_s10 = sphi %s1402_s10, %s1841_s10   ;;  %s1311_s9 = sphi %s1400_s9, %s1840_s9  }
   0x3   : > { %s43_s14 = ssub.s32 %s1319_s11, %s1415_s13  ;;  %s46_s15 = sadd.s32 1, %s1315_s10 }
   0x4   : > { %p44_p0 = scmp.eq.s32.totalorder %s43_s14, 0  ;;  %p56_p1 = scmp.ne.s32.totalorder %s1315_s10, %s1311_s9 }
   0x5   : > { %p57_p2 = scmp.eq.s32.totalorder %s1413_s12, 1  ;;  %p996_p3 = scmp.ge.s32.totalorder %s1319_s11, 1 }
   0x6   : > { %s1423_s16 = scalar_select %p44_p0, %s1315_s10, %s46_s15  }
   0x7   : > { %p1425_p4 = por %p57_p2, %p56_p1  ;;  %p124_p5 = scmp.lt.s32.totalorder %s1319_s11, 3 }
   0x9   : > { %p125_p6 = pnand %p996_p3, %p124_p5 }
   0xa   : > { %s1430_s18 = smul.u32 (!%p125_p6), 12, %s1413_s12  ;;  %vm189_vm0 = vcmask (!%p125_p6), 261120   ;;  %v466_v54 = vlaneseq (!%p125_p6)  ;;  %vm481_vm6 = vcmask (!%p125_p6), 15360   ;;  %s144_s24 = sand.u32 (!%p125_p6), 1, %s1311_s9  }
   0xb   : > { %128 = sbr.rel (%p125_p6) target bundleno = 388 (0x184), region = 24 }
   0xc   : > { %p158_p7 = scmp.lt.s32.totalorder (!%p125_p6), %s1430_s18, 19  ;;  %v1542_v63 = vand.u32 (!%p125_p6), 127, %v466_v54  ;;  %s1568_s25 = smul.u32 (!%p125_p6), 96, %s144_s24 }
   0xe   : > { %vm468_vm5 = vcmp.eq.s32.totalorder (!%p125_p6), %v1542_v63, 0  ;;  %s1591_s26 = scalar_lea.vmem (!%p125_p6), [#allocation3], %s1568_s25   ;;  %s1622_s27 = scalar_lea.vmem (!%p125_p6), [#allocation2], %s1568_s25  }
  0x12   : > { %s159_s19 = scalar_select %p158_p7, %s1430_s18, 19 }
  0x13   : > { %s506_s28 = ssub.s32 (%p1425_p4), 20, %s1430_s18  ;;  %s1020_s29 = smul.u32 (%p1425_p4), 96, %s1413_s12 }
  0x14   : > { %s997_s20 = sshll.u32 %s159_s19, 3  ;;  %p507_p8 = scmp.lt.s32.totalorder (%p1425_p4), %s506_s28, 12 }
  0x15   : > { %s161_s23 = scalar_lea.vmem %s1830_s0, %s997_s20  ;;  %s1729_s4 = scalar_lea.vmem (%p1425_p4), %s1831_s1, %s1020_s29  }
  0x16   : > { %v1437_v0 = vld [vmem:[%s161_s23 + $0x10] sm:$0xff]  ;;  %v1439_v1 = vld [vmem:[%s161_s23] sm:$0xff]  ;;  %v1441_v2 = vld [vmem:[%s161_s23 + $0x18] sm:$0xff] }
  0x17   : > { %v196_v3 = vsel %vm189_vm0, %v1437_v0, inf  ;;  %v190_v4 = vsel %vm189_vm0, %v1439_v1, inf  ;;  %v1447_v5 = vld [vmem:[%s161_s23 + $0x8] sm:$0xff]  ;;  %v199_v6 = vsel %vm189_vm0, %v1441_v2, inf  ;;  %v1455_v9 = vld [vmem:[%s161_s23 + $0x20] sm:$0xff]  ;;  %v1461_v12 = vld [vmem:[%s161_s23 + $0x38] sm:$0xff] }
  0x18   : > { %197 = vmin.xlane.f32.xlu1 %v196_v3  ;;  %191 = vmin.xlane.f32.xlu0 %v190_v4  ;;  %v193_v7 = vsel %vm189_vm0, %v1447_v5, inf  ;;  %v1453_v8 = vld [vmem:[%s161_s23 + $0x28] sm:$0xff]  ;;  %v202_v11 = vsel %vm189_vm0, %v1455_v9, inf  ;;  %v1463_v13 = vld [vmem:[%s161_s23 + $0x30] sm:$0xff]  ;;  %v211_v14 = vsel %vm189_vm0, %v1461_v12, inf  ;;  %v1471_v17 = vld [vmem:[%s161_s23 + $0x40] sm:$0xff] }
  0x19   : > { %v205_v10 = vsel %vm189_vm0, %v1453_v8, inf  ;;  %v208_v15 = vsel %vm189_vm0, %v1463_v13, inf  ;;  %v1469_v16 = vld [vmem:[%s161_s23 + $0x48] sm:$0xff]  ;;  %v214_v19 = vsel %vm189_vm0, %v1471_v17, inf  ;;  %v1477_v20 = vld [vmem:[%s161_s23 + $0x58] sm:$0xff]  ;;  %v1479_v21 = vld [vmem:[%s161_s23 + $0x50] sm:$0xff] }
  0x1a   : > { %v217_v18 = vsel %vm189_vm0, %v1469_v16, inf  ;;  %v223_v22 = vsel %vm189_vm0, %v1477_v20, inf  ;;  %v220_v23 = vsel %vm189_vm0, %v1479_v21, inf  ;;  %v229_v24 = vsel %vm189_vm0, %v1447_v5, -inf }
  0x1b   : > { %v226_v25 = vsel %vm189_vm0, %v1439_v1, -inf  ;;  %v235_v26 = vsel %vm189_vm0, %v1441_v2, -inf  ;;  %v232_v27 = vsel %vm189_vm0, %v1437_v0, -inf  ;;  %v241_v28 = vsel %vm189_vm0, %v1453_v8, -inf }
  0x1c   : > { %200 = vmin.xlane.f32.xlu1 %v199_v6  ;;  %194 = vmin.xlane.f32.xlu0 %v193_v7  ;;  %v238_v29 = vsel %vm189_vm0, %v1455_v9, -inf  ;;  %v247_v30 = vsel %vm189_vm0, %v1461_v12, -inf  ;;  %v244_v31 = vsel %vm189_vm0, %v1463_v13, -inf  ;;  %v253_v32 = vsel %vm189_vm0, %v1469_v16, -inf }
  0x1d   : > { %v250_v33 = vsel %vm189_vm0, %v1471_v17, -inf  ;;  %v259_v34 = vsel %vm189_vm0, %v1477_v20, -inf  ;;  %v256_v35 = vsel %vm189_vm0, %v1479_v21, -inf }
  0x20   : > { %206 = vmin.xlane.f32.xlu1 %v205_v10  ;;  %203 = vmin.xlane.f32.xlu0 %v202_v11 }
  0x24   : > { %212 = vmin.xlane.f32.xlu1 %v211_v14  ;;  %209 = vmin.xlane.f32.xlu0 %v208_v15 }
  0x28   : > { %218 = vmin.xlane.f32.xlu1 %v217_v18  ;;  %215 = vmin.xlane.f32.xlu0 %v214_v19 }
  0x2c   : > { %224 = vmin.xlane.f32.xlu1 %v223_v22  ;;  %221 = vmin.xlane.f32.xlu0 %v220_v23 }
  0x30   : > { %230 = vmax.xlane.f32.xlu1 %v229_v24  ;;  %227 = vmax.xlane.f32.xlu0 %v226_v25 }
  0x34   : > { %236 = vmax.xlane.f32.xlu1 %v235_v26  ;;  %233 = vmax.xlane.f32.xlu0 %v232_v27 }
  0x38   : > { %242 = vmax.xlane.f32.xlu1 %v241_v28  ;;  %239 = vmax.xlane.f32.xlu0 %v238_v29 }
  0x3c   : > { %248 = vmax.xlane.f32.xlu1 %v247_v30  ;;  %245 = vmax.xlane.f32.xlu0 %v244_v31 }
  0x40   : > { %254 = vmax.xlane.f32.xlu1 %v253_v32  ;;  %251 = vmax.xlane.f32.xlu0 %v250_v33 }
  0x44   : > { %260 = vmax.xlane.f32.xlu1 %v259_v34  ;;  %257 = vmax.xlane.f32.xlu0 %v256_v35 }
  0xa5   : > { %v1509_v36 = vpop.xlane.xlu1 %197  ;;  %v1511_v37 = vpop.xlane.xlu0 %191 }
  0xa6   : > { %v336_v24 = vsub.f32 0.0, %v1509_v36  ;;  %v334_v25 = vsub.f32 0.0, %v1511_v37 }
  0xa9   : > { %v1513_v38 = vpop.xlane.xlu1 %200  ;;  %v1515_v39 = vpop.xlane.xlu0 %194 }
  0xaa   : > { %v337_v28 = vsub.f32 0.0, %v1513_v38  ;;  %v335_v31 = vsub.f32 0.0, %v1515_v39 }
  0xad   : > { %v1517_v40 = vpop.xlane.xlu1 %206  ;;  %v1519_v41 = vpop.xlane.xlu0 %203 }
  0xae   : > { %v339_v32 = vsub.f32 0.0, %v1517_v40  ;;  %v338_v33 = vsub.f32 0.0, %v1519_v41 }
  0xb1   : > { %v1521_v42 = vpop.xlane.xlu1 %212  ;;  %v1523_v43 = vpop.xlane.xlu0 %209 }
  0xb2   : > { %v341_v54 = vsub.f32 0.0, %v1521_v42 }
  0xb5   : > { %v1525_v44 = vpop.xlane.xlu1 %218  ;;  %v1527_v45 = vpop.xlane.xlu0 %215 }
  0xb9   : > { %v1529_v46 = vpop.xlane.xlu1 %224  ;;  %v1531_v47 = vpop.xlane.xlu0 %221 }
  0xbd   : > { %v231_v48 = vpop.xlane.xlu1 %230  ;;  %v228_v49 = vpop.xlane.xlu0 %227 }
  0xbe   : > { %v263_v50 = vsub.f32 %v231_v48, %v1515_v39  ;;  %v262_v51 = vsub.f32 %v228_v49, %v1511_v37 }
  0xc0   : > { %v275_v52 = vmul.f32 0.06666667, %v263_v50  ;;  %v274_v53 = vmul.f32 0.06666667, %v262_v51 }
  0xc1   : > { %v237_v55 = vpop.xlane.xlu1 %236  ;;  %v234_v56 = vpop.xlane.xlu0 %233 }
  0xc2   : > { %vm287_vm1 = vcmp.le.f32.partialorder %v275_v52, 0.0  ;;  %vm286_vm2 = vcmp.le.f32.partialorder %v274_v53, 0.0  ;;  %v265_v57 = vsub.f32 %v237_v55, %v1513_v38  ;;  %v264_v58 = vsub.f32 %v234_v56, %v1509_v36 }
  0xc3   : > { %v1537_v59 = vsel %vm287_vm1, 1.0, %v275_v52  ;;  %v1539_v60 = vsel %vm286_vm2, 1.0, %v274_v53  ;;  %v340_v55 = vsub.f32 0.0, %v1523_v43 }
  0xc4   : > { %1201 = vrcp.f32 %v1537_v59  ;;  %v277_v61 = vmul.f32 0.06666667, %v265_v57  ;;  %v276_v62 = vmul.f32 0.06666667, %v264_v58 }
  0xc5   : > { %1203 = vrcp.f32 %v1539_v60  ;;  %v243_v3 = vpop.xlane.xlu1 %242  ;;  %v240_v4 = vpop.xlane.xlu0 %239 }
  0xc6   : > { %vm289_vm3 = vcmp.le.f32.partialorder %v277_v61, 0.0  ;;  %vm288_vm4 = vcmp.le.f32.partialorder %v276_v62, 0.0  ;;  %v267_v6 = vsub.f32 %v243_v3, %v1517_v40  ;;  %v266_v7 = vsub.f32 %v240_v4, %v1519_v41 }
  0xc7   : > { %v1547_v10 = vsel %vm289_vm3, 1.0, %v277_v61  ;;  %v1549_v11 = vsel %vm288_vm4, 1.0, %v276_v62 }
  0xc8   : > { %1205 = vrcp.f32 %v1547_v10  ;;  %v279_v14 = vmul.f32 0.06666667, %v267_v6  ;;  %v278_v15 = vmul.f32 0.06666667, %v266_v7 }
  0xc9   : > { %1207 = vrcp.f32 %v1549_v11  ;;  %v249_v18 = vpop.xlane.xlu1 %248  ;;  %v246_v19 = vpop.xlane.xlu0 %245 }
  0xca   : > { %vm291_vm7 = vcmp.le.f32.partialorder %v279_v14, 0.0  ;;  %vm290_vm8 = vcmp.le.f32.partialorder %v278_v15, 0.0  ;;  %v269_v22 = vsub.f32 %v249_v18, %v1521_v42  ;;  %v268_v23 = vsub.f32 %v246_v19, %v1523_v43 }
  0xcb   : > { %v1559_v26 = vsel %vm291_vm7, 1.0, %v279_v14  ;;  %v1561_v27 = vsel %vm290_vm8, 1.0, %v278_v15 }
  0xcc   : > { %1209 = vrcp.f32 %v1559_v26  ;;  %v281_v29 = vmul.f32 0.06666667, %v269_v22  ;;  %v280_v30 = vmul.f32 0.06666667, %v268_v23 }
  0xcd   : > { %1211 = vrcp.f32 %v1561_v27  ;;  %v255_v34 = vpop.xlane.xlu1 %254  ;;  %v252_v35 = vpop.xlane.xlu0 %251 }
  0xce   : > { %v1202_v36 = vpop.eup %1201  ;;  %vm293_vm9 = vcmp.le.f32.partialorder %v281_v29, 0.0  ;;  %vm292_vm10 = vcmp.le.f32.partialorder %v280_v30, 0.0  ;;  %v271_v37 = vsub.f32 %v255_v34, %v1525_v44  ;;  %v270_v38 = vsub.f32 %v252_v35, %v1527_v45 }
  0xcf   : > { %v1204_v48 = vpop.eup %1203  ;;  %v347_v49 = vmul.f32 %v1202_v36, %v335_v31  ;;  %v371_v39 = vmul.f32 %v1202_v36, %v1447_v5  ;;  %v1574_v40 = vsel %vm293_vm9, 1.0, %v281_v29  ;;  %v1576_v50 = vsel %vm292_vm10, 1.0, %v280_v30 }
  0xd0   : > { %v346_v51 = vmul.f32 %v1204_v48, %v334_v25  ;;  %v370_v52 = vmul.f32 %v1204_v48, %v1439_v1  ;;  %1213 = vrcp.f32 %v1574_v40  ;;  %v283_v53 = vmul.f32 0.06666667, %v271_v37 }
  0xd1   : > { %v1024_v56 = vround.rtne.f32 %v347_v49  ;;  %v1036_v57 = vround.rtne.f32 %v371_v39  ;;  %v1582_v58 = vpop.xlane.xlu1 %260  ;;  %1215 = vrcp.f32 %v1576_v50  ;;  %v1585_v3 = vmul.f32 0.06666667, %v270_v38 }
  0xd2   : > { %v1206_v5 = vpop.eup %1205  ;;  %v1023_v61 = vround.rtne.f32 %v346_v51  ;;  %v1035_v62 = vround.rtne.f32 %v370_v52  ;;  %vm295_vm11 = vcmp.le.f32.partialorder %v283_v53, 0.0  ;;  %v273_v19 = vsub.f32 %v1582_v58, %v1529_v46 }
  0xd3   : > { %v1208_v1 = vpop.eup %1207  ;;  %v395_v4 = vsub.f32 0.0, %v1024_v56  ;;  %v470_v6 = vsel %vm468_vm5, %v1537_v59, %v1024_v56  ;;  %v349_v7 = vmul.f32 %v1206_v5, %v337_v28  ;;  %v373_v18 = vmul.f32 %v1206_v5, %v1441_v2 }
  0xd4   : > { %483 = vst.msk [vmem:[%s1591_s26 + $0x8] sm:$0xff] %vm481_vm6, %v470_v6  ;;  %v394_v14 = vsub.f32 0.0, %v1023_v61  ;;  %v469_v15 = vsel %vm468_vm5, %v1539_v60, %v1023_v61  ;;  %v407_v22 = vsub.f32 15.0, %v1024_v56  ;;  %v348_v28 = vmul.f32 %v1208_v1, %v336_v24 }
  0xd5   : > { %v419_v23 = vmax.f32 %v395_v4, %v1036_v57  ;;  %482 = vst.msk [vmem:[%s1591_s26] sm:$0xff] %vm481_vm6, %v469_v15  ;;  %v1026_v25 = vround.rtne.f32 %v349_v7  ;;  %v406_v30 = vsub.f32 15.0, %v1023_v61  ;;  %v1038_v34 = vround.rtne.f32 %v373_v18 }
  0xd6   : > { %v1210_v29 = vpop.eup %1209  ;;  %v418_v31 = vmax.f32 %v394_v14, %v1035_v62  ;;  %v372_v35 = vmul.f32 %v1208_v1, %v1437_v0  ;;  %v1608_v48 = vsel %vm295_vm11, 1.0, %v283_v53  ;;  %v1025_v24 = vround.rtne.f32 %v348_v28 }
  0xd7   : > { %v1212_v36 = vpop.eup %1211  ;;  %v431_v37 = vmin.f32 %v407_v22, %v419_v23  ;;  %v397_v38 = vsub.f32 0.0, %v1026_v25  ;;  %v472_v2 = vsel %vm468_vm5, %v1547_v10, %v1026_v25  ;;  %v409_v39 = vsub.f32 15.0, %v1026_v25 }
  0xd8   : > { %v430_v49 = vmin.f32 %v406_v30, %v418_v31  ;;  %485 = vst.msk [vmem:[%s1591_s26 + $0x18] sm:$0xff] %vm481_vm6, %v472_v2  ;;  %v351_v51 = vmul.f32 %v1210_v29, %v339_v32  ;;  %vm294_vm12 = vcmp.le.f32.partialorder %v1585_v3, 0.0  ;;  %v375_v56 = vmul.f32 %v1210_v29, %v1453_v8 }
  0xd9   : > { %v443_v0 = vmul.f32 %v431_v37, %v1537_v59  ;;  %v421_v52 = vmax.f32 %v397_v38, %v1038_v34  ;;  %v350_v57 = vmul.f32 %v1212_v36, %v338_v33  ;;  %v1037_v61 = vround.rtne.f32 %v372_v35 }
  0xda   : > { %v1214_v53 = vpop.eup %1213  ;;  %v442_v5 = vmul.f32 %v430_v49, %v1539_v60  ;;  %v396_v62 = vsub.f32 0.0, %v1025_v24  ;;  %v471_v1 = vsel %vm468_vm5, %v1549_v11, %v1025_v24  ;;  %v408_v8 = vsub.f32 15.0, %v1025_v24 }
  0xdb   : > { %455 = vst.msk [vmem:[%s1622_s27 + $0x8] sm:$0xff] %vm189_vm0, %v443_v0  ;;  %v433_v59 = vmin.f32 %v409_v39, %v421_v52  ;;  %v1028_v41 = vround.rtne.f32 %v351_v51  ;;  %v1027_v32 = vround.rtne.f32 %v350_v57  ;;  %v1216_v60 = vpop.eup %1215  ;;  %v1040_v4 = vround.rtne.f32 %v375_v56 }
  0xdc   : > { %484 = vst.msk [vmem:[%s1591_s26 + $0x10] sm:$0xff] %vm481_vm6, %v471_v1  ;;  %v420_v33 = vmax.f32 %v396_v62, %v1037_v61  ;;  %v374_v6 = vmul.f32 %v1212_v36, %v1455_v9  ;;  %v353_v7 = vmul.f32 %v1214_v53, %v341_v54  ;;  %v377_v22 = vmul.f32 %v1214_v53, %v1461_v12 }
  0xdd   : > { %454 = vst.msk [vmem:[%s1622_s27] sm:$0xff] %vm189_vm0, %v442_v5  ;;  %v445_v14 = vmul.f32 %v433_v59, %v1547_v10  ;;  %v399_v15 = vsub.f32 0.0, %v1028_v41  ;;  %v474_v18 = vsel %vm468_vm5, %v1559_v26, %v1028_v41  ;;  %v411_v25 = vsub.f32 15.0, %v1028_v41 }
  0xde   : > { %v432_v23 = vmin.f32 %v408_v8, %v420_v33  ;;  %487 = vst.msk [vmem:[%s1591_s26 + $0x28] sm:$0xff] %vm481_vm6, %v474_v18  ;;  %v1039_v28 = vround.rtne.f32 %v374_v6  ;;  %v398_v9 = vsub.f32 0.0, %v1027_v32  ;;  %v410_v10 = vsub.f32 15.0, %v1027_v32 }
  0xdf   : > { %457 = vst.msk [vmem:[%s1622_s27 + $0x18] sm:$0xff] %vm189_vm0, %v445_v14  ;;  %v423_v42 = vmax.f32 %v399_v15, %v1040_v4  ;;  %v473_v54 = vsel %vm468_vm5, %v1561_v27, %v1027_v32  ;;  %v1030_v29 = vround.rtne.f32 %v353_v7  ;;  %v352_v31 = vmul.f32 %v1216_v60, %v340_v55 }
  0xe0   : > { %v444_v30 = vmul.f32 %v432_v23, %v1549_v11  ;;  %v422_v12 = vmax.f32 %v398_v9, %v1039_v28  ;;  %486 = vst.msk [vmem:[%s1591_s26 + $0x20] sm:$0xff] %vm481_vm6, %v473_v54  ;;  %v376_v34 = vmul.f32 %v1216_v60, %v1463_v13  ;;  %v1042_v36 = vround.rtne.f32 %v377_v22  ;;  %v258_v13 = vpop.xlane.xlu0 %257 }
  0xe1   : > { %v435_v35 = vmin.f32 %v411_v25, %v423_v42  ;;  %v401_v37 = vsub.f32 0.0, %v1030_v29  ;;  %v476_v38 = vsel %vm468_vm5, %v1574_v40, %v1030_v29  ;;  %v413_v11 = vsub.f32 15.0, %v1030_v29 }
  0xe2   : > { %456 = vst.msk [vmem:[%s1622_s27 + $0x10] sm:$0xff] %vm189_vm0, %v444_v30  ;;  %v434_v2 = vmin.f32 %v410_v10, %v422_v12  ;;  %v1029_v49 = vround.rtne.f32 %v352_v31  ;;  %1217 = vrcp.f32 %v1608_v48  ;;  %v1663_v39 = vsel %vm294_vm12, 1.0, %v1585_v3 }
  0xe3   : > { %489 = vst.msk [vmem:[%s1591_s26 + $0x38] sm:$0xff] %vm481_vm6, %v476_v38  ;;  %v447_v43 = vmul.f32 %v435_v35, %v1559_v26  ;;  %v425_v55 = vmax.f32 %v401_v37, %v1042_v36  ;;  %v285_v24 = vmul.f32 0.06666667, %v273_v19  ;;  %v1041_v0 = vround.rtne.f32 %v376_v34 }
  0xe4   : > { %v446_v51 = vmul.f32 %v434_v2, %v1561_v27  ;;  %v400_v52 = vsub.f32 0.0, %v1029_v49  ;;  %v475_v56 = vsel %vm468_vm5, %v1576_v50, %v1029_v49  ;;  %1219 = vrcp.f32 %v1663_v39 }
  0xe5   : > { %459 = vst.msk [vmem:[%s1622_s27 + $0x28] sm:$0xff] %vm189_vm0, %v447_v43  ;;  %v437_v26 = vmin.f32 %v413_v11, %v425_v55  ;;  %vm297_vm13 = vcmp.le.f32.partialorder %v285_v24, 0.0  ;;  %v272_v58 = vsub.f32 %v258_v13, %v1531_v47  ;;  %v412_v27 = vsub.f32 15.0, %v1029_v49 }
  0xe6   : > { %488 = vst.msk [vmem:[%s1591_s26 + $0x30] sm:$0xff] %vm481_vm6, %v475_v56  ;;  %v424_v3 = vmax.f32 %v400_v52, %v1041_v0  ;;  %v309_v19 = vsel %vm297_vm13, 1.0, %v285_v24  ;;  %v343_v1 = vsub.f32 0.0, %v1525_v44  ;;  %v345_v33 = vsub.f32 0.0, %v1529_v46 }
  0xe7   : > { %458 = vst.msk [vmem:[%s1622_s27 + $0x20] sm:$0xff] %vm189_vm0, %v446_v51  ;;  %v449_v57 = vmul.f32 %v437_v26, %v1574_v40  ;;  %1221 = vrcp.f32 %v309_v19  ;;  %v284_v53 = vmul.f32 0.06666667, %v272_v58  ;;  %v342_v40 = vsub.f32 0.0, %v1527_v45 }
  0xe8   : > { %v436_v5 = vmin.f32 %v412_v27, %v424_v3  ;;  %v344_v9 = vsub.f32 0.0, %v1531_v47 }
  0xe9   : > { %461 = vst.msk [vmem:[%s1622_s27 + $0x38] sm:$0xff] %vm189_vm0, %v449_v57  ;;  %vm296_vm14 = vcmp.le.f32.partialorder %v284_v53, 0.0 }
  0xea   : > { %v448_v61 = vmul.f32 %v436_v5, %v1576_v50  ;;  %v308_v62 = vsel %vm296_vm14, 1.0, %v284_v53 }
  0xeb   : > { %1223 = vrcp.f32 %v308_v62 }
  0xec   : > { %v1218_v59 = vpop.eup %1217  ;;  %460 = vst.msk [vmem:[%s1622_s27 + $0x30] sm:$0xff] %vm189_vm0, %v448_v61 }
  0xed   : > { %v355_v8 = vmul.f32 %v1218_v59, %v343_v1  ;;  %v379_v41 = vmul.f32 %v1218_v59, %v1469_v16 }
  0xee   : > { %v1220_v32 = vpop.eup %1219 }
  0xef   : > { %v1032_v60 = vround.rtne.f32 %v355_v8  ;;  %v354_v4 = vmul.f32 %v1220_v32, %v342_v40  ;;  %v378_v50 = vmul.f32 %v1220_v32, %v1471_v17  ;;  %v1044_v7 = vround.rtne.f32 %v379_v41 }
  0xf1   : > { %v1222_v6 = vpop.eup %1221  ;;  %v403_v44 = vsub.f32 0.0, %v1032_v60  ;;  %v478_v14 = vsel %vm468_vm5, %v1608_v48, %v1032_v60  ;;  %v1031_v16 = vround.rtne.f32 %v354_v4  ;;  %v415_v18 = vsub.f32 15.0, %v1032_v60 }
  0xf2   : > { %491 = vst.msk [vmem:[%s1591_s26 + $0x48] sm:$0xff] %vm481_vm6, %v478_v14  ;;  %v357_v15 = vmul.f32 %v1222_v6, %v345_v33  ;;  %v381_v45 = vmul.f32 %v1222_v6, %v1477_v20  ;;  %v1043_v22 = vround.rtne.f32 %v378_v50 }
  0xf3   : > { %v427_v46 = vmax.f32 %v403_v44, %v1044_v7  ;;  %v402_v23 = vsub.f32 0.0, %v1031_v16  ;;  %v477_v17 = vsel %vm468_vm5, %v1663_v39, %v1031_v16  ;;  %v414_v10 = vsub.f32 15.0, %v1031_v16 }
  0xf4   : > { %v1034_v25 = vround.rtne.f32 %v357_v15  ;;  %490 = vst.msk [vmem:[%s1591_s26 + $0x40] sm:$0xff] %vm481_vm6, %v477_v17  ;;  %v1046_v20 = vround.rtne.f32 %v381_v45 }
  0xf5   : > { %v1224_v28 = vpop.eup %1223  ;;  %v439_v42 = vmin.f32 %v415_v18, %v427_v46  ;;  %v426_v54 = vmax.f32 %v402_v23, %v1043_v22 }
  0xf6   : > { %v405_v29 = vsub.f32 0.0, %v1034_v25  ;;  %v480_v30 = vsel %vm468_vm5, %v309_v19, %v1034_v25  ;;  %v356_v31 = vmul.f32 %v1224_v28, %v344_v9  ;;  %v380_v34 = vmul.f32 %v1224_v28, %v1479_v21 }
  0xf7   : > { %v451_v12 = vmul.f32 %v439_v42, %v1608_v48  ;;  %493 = vst.msk [vmem:[%s1591_s26 + $0x58] sm:$0xff] %vm481_vm6, %v480_v30  ;;  %v438_v47 = vmin.f32 %v414_v10, %v426_v54  ;;  %v417_v35 = vsub.f32 15.0, %v1034_v25 }
  0xf8   : > { %v429_v36 = vmax.f32 %v405_v29, %v1046_v20  ;;  %v1033_v37 = vround.rtne.f32 %v356_v31  ;;  %v1045_v11 = vround.rtne.f32 %v380_v34 }
  0xf9   : > { %463 = vst.msk [vmem:[%s1622_s27 + $0x48] sm:$0xff] %vm189_vm0, %v451_v12  ;;  %v450_v38 = vmul.f32 %v438_v47, %v1663_v39 }
  0xfa   : > { %v441_v2 = vmin.f32 %v417_v35, %v429_v36  ;;  %v404_v49 = vsub.f32 0.0, %v1033_v37  ;;  %v479_v48 = vsel %vm468_vm5, %v308_v62, %v1033_v37  ;;  %v416_v21 = vsub.f32 15.0, %v1033_v37 }
  0xfb   : > { %462 = vst.msk [vmem:[%s1622_s27 + $0x40] sm:$0xff] %vm189_vm0, %v450_v38 }
  0xfc   : > { %v453_v13 = vmul.f32 %v441_v2, %v309_v19  ;;  %492 = vst.msk [vmem:[%s1591_s26 + $0x50] sm:$0xff] %vm481_vm6, %v479_v48  ;;  %v428_v43 = vmax.f32 %v404_v49, %v1045_v11  ;;  %504 = sbr.rel (!%p1425_p4) target bundleno = 320 (0x140), region = 28 }
  0xfe   : > { %465 = vst.msk [vmem:[%s1622_s27 + $0x58] sm:$0xff] %vm189_vm0, %v453_v13  ;;  %v440_v55 = vmin.f32 %v416_v21, %v428_v43 }
 0x100   : > { %v452_v24 = vmul.f32 %v440_v55, %v308_v62 }
 0x102   : > { %464 = vst.msk [vmem:[%s1622_s27 + $0x50] sm:$0xff] %vm189_vm0, %v452_v24 }
 0x103   : > { %s1844_s28 = smov (!%p507_p8, %s506_s28), 12 }
 0x104   : > { %s998_s5 = sshll.u32 %s1844_s28, 7 }
 0x105   : > { %p1001_p9 = scmp.eq.s32.totalorder %s998_s5, 0 }
 0x106   : > { %1225 = sdivrem.u32 (!%p1001_p9), %s1844_s28, 12 }
 0x107   : > { %515 = sbr.rel (%p1001_p9) target bundleno = 320 (0x140), region = 32 }
 0x10f   : > { %s1735_s6 = spop.drf %1225 }
 0x110   : > { %p1002_p10 = scmp.le.s32.totalorder %s1735_s6, 0 }
 0x111   : > { %s1834_s7 = smov (!%p1002_p10), %s1729_s4  ;;  %s1835_s8 = smov (!%p1002_p10), %s1622_s27 }
 0x112   : > { %912 = sbr.rel (%p1002_p10) target bundleno = 291 (0x123), region = 180  ;;  %s1744_s9 = smov (!%p1002_p10), 0  }
 0x113   : > { %s1746_s11 = smov (!%p1002_p10), 0  }
 0x119 LB: >> { %v601_v63 = vld [vmem:[%s1327_s8] sm:$0xff]  ;;  %v603_v39 = vld [vmem:[%s1327_s8 + $0x8] sm:$0xff]  ;;  %v605_v51 = vld [vmem:[%s1327_s8 + $0x10] sm:$0xff]  ;;  %s625_s14 = sadd.s32 1, %s1331_s9  ;;  %s595_s11 = sadd.s32 1, %s1335_s11   ;;  %s1335_s11 = sphi %s1746_s11, %s595_s11   ;;  %s1331_s9 = sphi %s1744_s9, %s1836_s9   ;;  %s1327_s8 = sphi %s1835_s8, %s630_s8   ;;  %s1323_s7 = sphi %s1834_s7, %s631_s7  }
 0x11a   : >> { %602 = vst [vmem:[%s1323_s7] sm:$0xff] %v601_v63  ;;  %604 = vst [vmem:[%s1323_s7 + $0x8] sm:$0xff] %v603_v39  ;;  %v607_v0 = vld [vmem:[%s1327_s8 + $0x18] sm:$0xff]  ;;  %v609_v52 = vld [vmem:[%s1327_s8 + $0x20] sm:$0xff]  ;;  %p626_p11 = scmp.ge.s32.totalorder %s625_s14, %s1735_s6  ;;  %p594_p12 = scmp.ge.s32.totalorder %s595_s11, %s1735_s6 }
 0x11b   : >> { %606 = vst [vmem:[%s1323_s7 + $0x10] sm:$0xff] %v605_v51  ;;  %v611_v56 = vld [vmem:[%s1327_s8 + $0x28] sm:$0xff]  ;;  %608 = vst [vmem:[%s1323_s7 + $0x18] sm:$0xff] %v607_v0  ;;  %v613_v26 = vld [vmem:[%s1327_s8 + $0x30] sm:$0xff] }
 0x11c   : >> { %610 = vst [vmem:[%s1323_s7 + $0x20] sm:$0xff] %v609_v52  ;;  %612 = vst [vmem:[%s1323_s7 + $0x28] sm:$0xff] %v611_v56  ;;  %v615_v58 = vld [vmem:[%s1327_s8 + $0x38] sm:$0xff]  ;;  %v617_v27 = vld [vmem:[%s1327_s8 + $0x40] sm:$0xff]  ;;  %s1846_s14 = smov (%p626_p11, %s625_s14), 0  ;;  %597 = sbr.rel (!%p594_p12) target bundleno = 281 (0x119), region = 186 }
 0x11d   : >> { %614 = vst [vmem:[%s1323_s7 + $0x30] sm:$0xff] %v613_v26  ;;  %616 = vst [vmem:[%s1323_s7 + $0x38] sm:$0xff] %v615_v58  ;;  %v619_v3 = vld [vmem:[%s1327_s8 + $0x48] sm:$0xff]  ;;  %v621_v19 = vld [vmem:[%s1327_s8 + $0x50] sm:$0xff]  ;;  %s628_s15 = smul.u32 96, %s1846_s14  ;;  %s1836_s9 = smov %s1846_s14 }
 0x11e   : >> { %618 = vst [vmem:[%s1323_s7 + $0x40] sm:$0xff] %v617_v27  ;;  %v623_v57 = vld [vmem:[%s1327_s8 + $0x58] sm:$0xff]  ;;  %620 = vst [vmem:[%s1323_s7 + $0x48] sm:$0xff] %v619_v3 }
 0x11f   : >> { %622 = vst [vmem:[%s1323_s7 + $0x50] sm:$0xff] %v621_v19  ;;  %624 = vst [vmem:[%s1323_s7 + $0x58] sm:$0xff] %v623_v57  ;;  %s630_s8 = scalar_lea.vmem %s1622_s27, %s628_s15 [#allocation2]   ;;  %s631_s7 = scalar_lea.vmem %s1729_s4, %s628_s15  }
 0x123 PF: > { %1227 = sdivrem.u32 %s1844_s28, 12 }
 0x124   : > { %s1003_s19 = smul.u32 96, %s1735_s6 }
 0x126   : > { %s636_s20 = scalar_lea.vmem %s1622_s27, %s1003_s19 [#allocation2]   ;;  %s638_s21 = scalar_lea.vmem %s1729_s4, %s1003_s19  }
 0x12c   : > { %s1228_s22 = spop.drf %1227 }
 0x12d   : > { %p1005_p13 = scmp.le.s32.totalorder %s1228_s22, 0 }
 0x12e   : > { %s1337_s23 = smov (!%p1005_p13), %s638_s21   ;;  %s1341_s24 = smov (!%p1005_p13), %s636_s20  }
 0x12f   : > { %926 = sbr.rel (%p1005_p13) target bundleno = 320 (0x140), region = 191  ;;  %s1345_s25 = smov (!%p1005_p13), 0  }
 0x130   : > { %s1349_s29 = smov (!%p1005_p13), 0  }
 0x136 LB: >> { %v648_v53 = vld [vmem:[%s1343_s24] sm:$0xff]  ;;  %s650_s30 = sadd.s32 1, %s1347_s25  ;;  %s642_s29 = sadd.s32 1, %s1351_s29   ;;  %s1351_s29 = sphi %s1349_s29, %s642_s29   ;;  %s1347_s25 = sphi %s1345_s25, %s1346_s25   ;;  %s1343_s24 = sphi %s1341_s24, %s655_s24   ;;  %s1339_s23 = sphi %s1337_s23, %s656_s23  }
 0x137   : >> { %649 = vst [vmem:[%s1339_s23] sm:$0xff] %v648_v53  ;;  %p651_p0 = scmp.ge.s32.totalorder %s650_s30, %s1228_s22  ;;  %p641_p1 = scmp.ge.s32.totalorder %s642_s29, %s1228_s22 }
 0x139   : >> { %s1848_s30 = smov (%p651_p0, %s650_s30), 0  ;;  %644 = sbr.rel (!%p641_p1) target bundleno = 310 (0x136), region = 197 }
 0x13a   : >> { %s1006_s27 = sshll.u32 %s1848_s30, 3  ;;  %s1346_s25 = smov %s1848_s30  }
 0x13b   : >> { %s655_s24 = scalar_lea.vmem %s636_s20, %s1006_s27 [#allocation2]   ;;  %s656_s23 = scalar_lea.vmem %s638_s21, %s1006_s27  }
 0x140 PF: > { %662 = sbr.rel (!%p1425_p4) target bundleno = 388 (0x184), region = 80  ;;  %s664_s28 = ssub.s32 (%p1425_p4), 20, %s1430_s18 }
 0x141   : > { %s1021_s3 = smul.u32 (%p1425_p4), 96, %s1413_s12  ;;  %p665_p2 = scmp.lt.s32.totalorder (%p1425_p4), %s664_s28, 12 }
 0x143   : > { %s1778_s6 = scalar_lea.vmem (%p1425_p4), %s1832_s2, %s1021_s3  }
 0x147   : > { %s1850_s28 = smov (!%p665_p2, %s664_s28), 12 }
 0x148   : > { %s1008_s7 = sshll.u32 %s1850_s28, 7 }
 0x149   : > { %p1011_p3 = scmp.eq.s32.totalorder %s1008_s7, 0 }
 0x14a   : > { %1229 = sdivrem.u32 (!%p1011_p3), %s1850_s28, 12 }
 0x14b   : > { %673 = sbr.rel (%p1011_p3) target bundleno = 388 (0x184), region = 84 }
 0x153   : > { %s1784_s17 = spop.drf %1229 }
 0x154   : > { %p1012_p4 = scmp.le.s32.totalorder %s1784_s17, 0 }
 0x155   : > { %s1837_s12 = smov (!%p1012_p4), %s1778_s6  ;;  %s1838_s18 = smov (!%p1012_p4), %s1591_s26 }
 0x156   : > { %940 = sbr.rel (%p1012_p4) target bundleno = 359 (0x167), region = 202  ;;  %s1793_s8 = smov (!%p1012_p4), 0  }
 0x157   : > { %s1795_s9 = smov (!%p1012_p4), 0  }
 0x15d LB: >> { %v759_v5 = vld [vmem:[%s1359_s18] sm:$0xff]  ;;  %v761_v61 = vld [vmem:[%s1359_s18 + $0x8] sm:$0xff]  ;;  %v763_v62 = vld [vmem:[%s1359_s18 + $0x10] sm:$0xff]  ;;  %s783_s11 = sadd.s32 1, %s1363_s8  ;;  %s753_s9 = sadd.s32 1, %s1367_s9   ;;  %s1367_s9 = sphi %s1795_s9, %s753_s9   ;;  %s1363_s8 = sphi %s1793_s8, %s1839_s8   ;;  %s1359_s18 = sphi %s1838_s18, %s788_s18   ;;  %s1355_s12 = sphi %s1837_s12, %s789_s12  }
 0x15e   : >> { %760 = vst [vmem:[%s1355_s12] sm:$0xff] %v759_v5  ;;  %762 = vst [vmem:[%s1355_s12 + $0x8] sm:$0xff] %v761_v61  ;;  %v765_v1 = vld [vmem:[%s1359_s18 + $0x18] sm:$0xff]  ;;  %v767_v59 = vld [vmem:[%s1359_s18 + $0x20] sm:$0xff]  ;;  %p784_p5 = scmp.ge.s32.totalorder %s783_s11, %s1784_s17  ;;  %p752_p6 = scmp.ge.s32.totalorder %s753_s9, %s1784_s17 }
 0x15f   : >> { %764 = vst [vmem:[%s1355_s12 + $0x10] sm:$0xff] %v763_v62  ;;  %v769_v8 = vld [vmem:[%s1359_s18 + $0x28] sm:$0xff]  ;;  %766 = vst [vmem:[%s1355_s12 + $0x18] sm:$0xff] %v765_v1  ;;  %v771_v41 = vld [vmem:[%s1359_s18 + $0x30] sm:$0xff] }
 0x160   : >> { %768 = vst [vmem:[%s1355_s12 + $0x20] sm:$0xff] %v767_v59  ;;  %770 = vst [vmem:[%s1355_s12 + $0x28] sm:$0xff] %v769_v8  ;;  %v773_v40 = vld [vmem:[%s1359_s18 + $0x38] sm:$0xff]  ;;  %v775_v32 = vld [vmem:[%s1359_s18 + $0x40] sm:$0xff]  ;;  %s1852_s11 = smov (%p784_p5, %s783_s11), 0  ;;  %755 = sbr.rel (!%p752_p6) target bundleno = 349 (0x15d), region = 208 }
 0x161   : >> { %772 = vst [vmem:[%s1355_s12 + $0x30] sm:$0xff] %v771_v41  ;;  %774 = vst [vmem:[%s1355_s12 + $0x38] sm:$0xff] %v773_v40  ;;  %v777_v60 = vld [vmem:[%s1359_s18 + $0x48] sm:$0xff]  ;;  %v779_v33 = vld [vmem:[%s1359_s18 + $0x50] sm:$0xff]  ;;  %s786_s14 = smul.u32 96, %s1852_s11  ;;  %s1839_s8 = smov %s1852_s11 }
 0x162   : >> { %776 = vst [vmem:[%s1355_s12 + $0x40] sm:$0xff] %v775_v32  ;;  %v781_v4 = vld [vmem:[%s1359_s18 + $0x58] sm:$0xff]  ;;  %778 = vst [vmem:[%s1355_s12 + $0x48] sm:$0xff] %v777_v60 }
 0x163   : >> { %780 = vst [vmem:[%s1355_s12 + $0x50] sm:$0xff] %v779_v33  ;;  %782 = vst [vmem:[%s1355_s12 + $0x58] sm:$0xff] %v781_v4  ;;  %s788_s18 = scalar_lea.vmem %s1591_s26, %s786_s14 [#allocation3]   ;;  %s789_s12 = scalar_lea.vmem %s1778_s6, %s786_s14  }
 0x167 PF: > { %1231 = sdivrem.u32 %s1850_s28, 12 }
 0x168   : > { %s1013_s15 = smul.u32 96, %s1784_s17 }
 0x16a   : > { %s794_s19 = scalar_lea.vmem %s1591_s26, %s1013_s15 [#allocation3]   ;;  %s796_s20 = scalar_lea.vmem %s1778_s6, %s1013_s15  }
 0x170   : > { %s1232_s21 = spop.drf %1231 }
 0x171   : > { %p1015_p7 = scmp.le.s32.totalorder %s1232_s21, 0 }
 0x172   : > { %s1369_s22 = smov (!%p1015_p7), %s796_s20   ;;  %s1373_s23 = smov (!%p1015_p7), %s794_s19  }
 0x173   : > { %954 = sbr.rel (%p1015_p7) target bundleno = 388 (0x184), region = 213  ;;  %s1377_s24 = smov (!%p1015_p7), 0  }
 0x174   : > { %s1381_s25 = smov (!%p1015_p7), 0  }
 0x17a LB: >> { %v806_v50 = vld [vmem:[%s1375_s23] sm:$0xff]  ;;  %s808_s29 = sadd.s32 1, %s1379_s24  ;;  %s800_s25 = sadd.s32 1, %s1383_s25   ;;  %s1383_s25 = sphi %s1381_s25, %s800_s25   ;;  %s1379_s24 = sphi %s1377_s24, %s1378_s24   ;;  %s1375_s23 = sphi %s1373_s23, %s813_s23   ;;  %s1371_s22 = sphi %s1369_s22, %s814_s22  }
 0x17b   : >> { %807 = vst [vmem:[%s1371_s22] sm:$0xff] %v806_v50  ;;  %p809_p8 = scmp.ge.s32.totalorder %s808_s29, %s1232_s21  ;;  %p799_p9 = scmp.ge.s32.totalorder %s800_s25, %s1232_s21 }
 0x17d   : >> { %s1854_s29 = smov (%p809_p8, %s808_s29), 0  ;;  %802 = sbr.rel (!%p799_p9) target bundleno = 378 (0x17a), region = 219 }
 0x17e   : >> { %s1016_s26 = sshll.u32 %s1854_s29, 3  ;;  %s1378_s24 = smov %s1854_s29  }
 0x17f   : >> { %s813_s23 = scalar_lea.vmem %s794_s19, %s1016_s26 [#allocation3]   ;;  %s814_s22 = scalar_lea.vmem %s796_s20, %s1016_s26  }
 0x184 PF: > { %p10_p10 = scmp.ge.s32.totalorder %s1415_s13, 4   ;;  %s1840_s9 = smov %s1315_s10 }
 0x185   : > { %s1841_s10 = smov %s1423_s16  ;;  %s1842_s11 = smov %s1415_s13 }
 0x186   :  { %12 = sbr.rel (!%p10_p10) target bundleno = 2 (0x2), region = 230 }

</bundles_post_ra>
